<compile_context>
chip_gen: v5e
topology: v5e:2x2
jax: 0.10.0
libtpu: 0.0.40
codegen_flags: <defaults>
</compile_context>

<pallas_src>
import jax
import jax.numpy as jnp
from jax.experimental import pallas as pl
from jax.experimental.pallas import tpu as pltpu

NEG_SLOPE = 0.01            # LeakyReLU negative slope (matches nn.LeakyReLU(0.01))
ROWS_PER_BLOCK = 2048       # 2048 x 512 x 4B = 4 MiB per f32 block
MIN_SPLIT_BYTES = 512 * 1024  # above this, force >= 2 blocks (v7x megacore sharding)


def _lrelu_kernel(x_ref, o_ref):
    x = x_ref[...]
    # LeakyReLU(0.01): max(x, 0.01*x) == where(x >= 0, x, 0.01*x) for all values
    # (2 VALU ops instead of cmp + select + mul).
    o_ref[...] = jnp.maximum(x, NEG_SLOPE * x)


def _round_up(a, b):
    return ((a + b - 1) // b) * b


def _lrelu_f32_flat(xf):
    """LeakyReLU(0.01) on a flat float32 array via a tiled, pipelined Pallas kernel."""
    n = xf.size

    # Adaptive lane width: widest of 512/256/128 dividing n -> lane-dense,
    # unmasked full-width vector stores, no lane padding in the common case.
    lane = None
    for cand in (512, 256, 128):
        if n % cand == 0:
            lane = cand
            break
    if lane is None:
        lane = 128
        padded = _round_up(n, lane)
        xf = jnp.pad(xf, (0, padded - n))
    else:
        padded = n
    rows = padded // lane

    total_bytes = rows * lane * 4
    if total_bytes <= MIN_SPLIT_BYTES:
        # Tiny array: one full-extent block (always a legal block shape).
        tr = rows
    elif rows <= ROWS_PER_BLOCK:
        # Mid-size: >= 2 blocks so the parallel axis can shard across v7x's 2 TCs.
        tr = _round_up(pl.cdiv(rows, 2), 8)
    else:
        tr = ROWS_PER_BLOCK
    grid = pl.cdiv(rows, tr)  # ragged last block OK: masked stores, elementwise op

    x2 = xf.reshape(rows, lane)
    spec = pl.BlockSpec((tr, lane), lambda i: (i, 0))

    out = pl.pallas_call(
        _lrelu_kernel,
        out_shape=jax.ShapeDtypeStruct((rows, lane), jnp.float32),
        grid=(grid,),
        in_specs=[spec],
        out_specs=spec,
        compiler_params=pltpu.CompilerParams(
            dimension_semantics=("parallel",),
            allow_input_fusion=[True],          # absorb real/imag stack producer
            vmem_limit_bytes=32 * 1024 * 1024,  # 4 MiB blocks * 4 bufs = 16 MiB
        ),
    )(x2)

    out = out.reshape(-1)
    if padded != n:
        out = out[:n]
    return out


def complex_lrelu(x):
    """x: complex array. Returns LeakyReLU(0.01)(x.real) + 1j*LeakyReLU(0.01)(x.imag)."""
    shape = x.shape
    # Interleave real/imag on the last axis (complex64-compatible layout); with
    # allow_input_fusion this producer is fused into the kernel's input DMA.
    xf = jnp.stack([jnp.real(x), jnp.imag(x)], axis=-1)          # (..., 2) float32
    yf = _lrelu_f32_flat(xf.reshape(-1)).reshape(shape + (2,))
    return jax.lax.complex(yf[..., 0], yf[..., 1])               # complex64


if __name__ == "__main__":
    key = jax.random.PRNGKey(0)
    kr, ki = jax.random.split(key)
    shape = (2, 4, 16, 16)  # N, C, H, W
    x_real = jax.random.normal(kr, shape, dtype=jnp.float32)
    x_imag = jax.random.normal(ki, shape, dtype=jnp.float32)
    x = jax.lax.complex(x_real, x_imag)

    y = jax.jit(complex_lrelu)(x)
    jax.block_until_ready(y)

    # Correctness check against pure-JAX reference (matches torch.nn.LeakyReLU(0.01)).
    def ref_lrelu(v):
        return jnp.where(v >= 0, v, NEG_SLOPE * v)

    y_ref = jax.lax.complex(ref_lrelu(x_real), ref_lrelu(x_imag))
    assert y.dtype == jnp.complex64
    assert jnp.allclose(y, y_ref, atol=1e-6), "mismatch vs reference"

    print("KERNEL_OK")
</pallas_src>

<mosaic_0001>
module attributes {stable_mosaic.version = 11 : i64} {
  func.func @_lrelu_kernel(%arg0: i32, %arg1: memref<8x512xf32, #tpu.memory_space<vmem>>, %arg2: memref<8x512xf32, #tpu.memory_space<vmem>>) attributes {dimension_semantics = [#tpu.dimension_semantics<parallel>], iteration_bounds = array<i64: 1>, scalar_prefetch = 0 : i64, scratch_operands = 0 : i64, tpu.core_type = #tpu.core_type<tc>, window_params = [{transform_indices = @transform_0, window_bounds = array<i64: 8, 512>}, {transform_indices = @transform_1, window_bounds = array<i64: 8, 512>}]} {
    %c0 = arith.constant 0 : index
    %c0_0 = arith.constant 0 : index
    %0 = vector.load %arg1[%c0, %c0_0] : memref<8x512xf32, #tpu.memory_space<vmem>>, vector<8x512xf32>
    %cst = arith.constant 0.00999999977 : f32
    %1 = vector.broadcast %cst : f32 to vector<8x512xf32>
    %2 = arith.mulf %1, %0 : vector<8x512xf32>
    %3 = arith.maximumf %0, %2 : vector<8x512xf32>
    %c0_1 = arith.constant 0 : index
    %c0_2 = arith.constant 0 : index
    %4 = vector.load %arg2[%c0_1, %c0_2] : memref<8x512xf32, #tpu.memory_space<vmem>>, vector<8x512xf32>
    tpu.vector_store %arg2[%c0_1, %c0_2], %3 {strides = array<i32>} : memref<8x512xf32, #tpu.memory_space<vmem>>, vector<8x512xf32>,
    return
  }
  func.func @transform_0(%arg0: i32) -> (i32, i32) {
    %c0_i32 = arith.constant 0 : i32
    %c0_i32_0 = arith.constant 0 : i32
    return %arg0, %c0_i32 : i32, i32
  }
  func.func @transform_1(%arg0: i32) -> (i32, i32) {
    %c0_i32 = arith.constant 0 : i32
    %c0_i32_0 = arith.constant 0 : i32
    return %arg0, %c0_i32 : i32, i32
  }
}

</mosaic_0001>

<bundles_post_ra>
// kernel: custom-call
= control target key start
LH: loop header
LB: loop body
LE: loop exit
PB: predicated region body
PF: predicated region fallthrough
CT: control target
= control target key end

     0   :  { %2 = vsyncpa [#allocation0], 0  ;;  %s55_s0 = inlined_call_operand.hbm [shape: c64[2,4,16,16], index: 0, kind: input, shape index: {}]   ;;  %s56_s1 = inlined_call_operand.vmem [shape: f32[2,4,16,16], index: 1, kind: output, shape index: {}]  }
   0x1   :  { %s4_s8 = sshll.u32 %s55_s0, 4  ;;  %s6_s11 = sshll.u32 %s56_s1, 4  ;;  %s5_s8 = int_to_ptr.hbm [resolvable:$true] %s4_s8  ;;  %s7_s11 = int_to_ptr.vmem [resolvable:$true] %s6_s11 }
   0x2   :  { %9 = dma.hbm_to_vmem [thread:$0]  %s5_s8, 2048, %s7_s11, [#allocation0] }
   0x3   :  { %37 = dma.done.wait [#allocation0], 2048  }
   0x4   :  { %38 = vsyncadd [#allocation0], 4294965248 }
   0x5   :  { %12 = vsyncpa [#allocation0], 1 }

// kernel: custom-call.1
= control target key start
LH: loop header
LB: loop body
LE: loop exit
PB: predicated region body
PF: predicated region fallthrough
CT: control target
= control target key end

     0   :  { %s56_s0 = inlined_call_operand.hbm [shape: c64[2,4,16,16], index: 0, kind: input, shape index: {}]   ;;  %s57_s1 = inlined_call_operand.vmem [shape: f32[2,4,16,16], index: 1, kind: output, shape index: {}]  }
   0x1   :  { %s2_s8 = scalar_lea.hbm %s56_s0, 128 }
   0x2   :  { %3 = vsyncpa [#allocation0], 0  ;;  %s5_s9 = sshll.u32 %s2_s8, 4  ;;  %s7_s12 = sshll.u32 %s57_s1, 4  ;;  %s6_s9 = int_to_ptr.hbm [resolvable:$true] %s5_s9  ;;  %s8_s12 = int_to_ptr.vmem [resolvable:$true] %s7_s12 }
   0x3   :  { %10 = dma.hbm_to_vmem [thread:$0]  %s6_s9, 2048, %s8_s12, [#allocation0] }
   0x4   :  { %38 = dma.done.wait [#allocation0], 2048  }
   0x5   :  { %39 = vsyncadd [#allocation0], 4294965248 }
   0x6   :  { %13 = vsyncpa [#allocation0], 1 }

// kernel: complex_lrelu.1
= control target key start
LH: loop header
LB: loop body
LE: loop exit
PB: predicated region body
PF: predicated region fallthrough
CT: control target
= control target key end

     0   :  { %s62_s0 = inlined_call_operand.vmem [shape: f32[8,512], index: 0, kind: input, shape index: {}]   ;;  %s63_s1 = inlined_call_operand.vmem [shape: f32[8,512], index: 1, kind: output, shape index: {}]  }
   0x1   :  { %v8_v0 = vld [vmem:[%s62_s0] sm:$0xff]  ;;  %v9_v1 = vld [vmem:[%s62_s0 + $0x8] sm:$0xff]  ;;  %v10_v2 = vld [vmem:[%s62_s0 + $0x10] sm:$0xff] }
   0x2   :  { %v12_v3 = vmul.f32 0.01, %v8_v0  ;;  %v13_v4 = vmul.f32 0.01, %v9_v1  ;;  %v14_v5 = vmul.f32 0.01, %v10_v2 }
   0x3   :  { %v11_v6 = vld [vmem:[%s62_s0 + $0x18] sm:$0xff] }
   0x4   :  { %v16_v7 = vmax.f32 %v8_v0, %v12_v3  ;;  %v17_v8 = vmax.f32 %v9_v1, %v13_v4  ;;  %v18_v9 = vmax.f32 %v10_v2, %v14_v5  ;;  %v15_v10 = vmul.f32 0.01, %v11_v6 }
   0x6   :  { %20 = vst [vmem:[%s63_s1] sm:$0xff] %v16_v7  ;;  %v19_v11 = vmax.f32 %v11_v6, %v15_v10 }
   0x7   :  { %21 = vst [vmem:[%s63_s1 + $0x8] sm:$0xff] %v17_v8 }
   0x8   :  { %22 = vst [vmem:[%s63_s1 + $0x10] sm:$0xff] %v18_v9 }
   0x9   :  { %23 = vst [vmem:[%s63_s1 + $0x18] sm:$0xff] %v19_v11 }

// kernel: custom-call.2
= control target key start
LH: loop header
LB: loop body
LE: loop exit
PB: predicated region body
PF: predicated region fallthrough
CT: control target
= control target key end

     0   :  { %s1611_s0 = inlined_call_operand.vmem [shape: f32[2,4,16,16], index: 0, kind: input, shape index: {}]   ;;  %s1612_s2 = inlined_call_operand.vmem [shape: c64[2,4,16,16], index: 2, kind: output, shape index: {}]   ;;  %s1613_s1 = inlined_call_operand.vmem [shape: f32[2,4,16,16], index: 1, kind: input, shape index: {}]  }
   0x1   :  { %v4_v0 = vld [vmem:[%s1611_s0] sm:$0xff]  ;;  %v575_v1 = vld [vmem:[%s1611_s0 + $0x8] sm:$0xff]  ;;  %v577_v2 = vld [vmem:[%s1611_s0 + $0x10] sm:$0xff] }
   0x2   :  { %5 = vst [vmem:[%s1612_s2] sm:$0xff] %v4_v0  ;;  %v579_v3 = vld [vmem:[%s1611_s0 + $0x18] sm:$0xff]  ;;  %v581_v4 = vld [vmem:[%s1611_s0 + $0x20] sm:$0xff]  ;;  %v583_v5 = vld [vmem:[%s1611_s0 + $0x28] sm:$0xff] }
   0x3   :  { %576 = vst [vmem:[%s1612_s2 + $0x8] sm:$0xff] %v575_v1  ;;  %v585_v6 = vld [vmem:[%s1611_s0 + $0x30] sm:$0xff]  ;;  %v587_v7 = vld [vmem:[%s1611_s0 + $0x38] sm:$0xff]  ;;  %v589_v8 = vld [vmem:[%s1611_s0 + $0x40] sm:$0xff] }
   0x4   :  { %578 = vst [vmem:[%s1612_s2 + $0x10] sm:$0xff] %v577_v2  ;;  %v591_v9 = vld [vmem:[%s1611_s0 + $0x48] sm:$0xff]  ;;  %v593_v10 = vld [vmem:[%s1611_s0 + $0x50] sm:$0xff]  ;;  %v595_v11 = vld [vmem:[%s1611_s0 + $0x58] sm:$0xff] }
   0x5   :  { %580 = vst [vmem:[%s1612_s2 + $0x18] sm:$0xff] %v579_v3  ;;  %v597_v12 = vld [vmem:[%s1611_s0 + $0x60] sm:$0xff]  ;;  %v599_v13 = vld [vmem:[%s1611_s0 + $0x68] sm:$0xff]  ;;  %v601_v14 = vld [vmem:[%s1611_s0 + $0x70] sm:$0xff] }
   0x6   :  { %582 = vst [vmem:[%s1612_s2 + $0x20] sm:$0xff] %v581_v4  ;;  %v603_v15 = vld [vmem:[%s1611_s0 + $0x78] sm:$0xff]  ;;  %v605_v16 = vld [vmem:[%s1611_s0 + $0x80] sm:$0xff]  ;;  %v607_v17 = vld [vmem:[%s1611_s0 + $0x88] sm:$0xff] }
   0x7   :  { %584 = vst [vmem:[%s1612_s2 + $0x28] sm:$0xff] %v583_v5  ;;  %v609_v18 = vld [vmem:[%s1611_s0 + $0x90] sm:$0xff]  ;;  %v611_v19 = vld [vmem:[%s1611_s0 + $0x98] sm:$0xff]  ;;  %v613_v20 = vld [vmem:[%s1611_s0 + $0xa0] sm:$0xff] }
   0x8   :  { %586 = vst [vmem:[%s1612_s2 + $0x30] sm:$0xff] %v585_v6  ;;  %v615_v21 = vld [vmem:[%s1611_s0 + $0xa8] sm:$0xff]  ;;  %v617_v22 = vld [vmem:[%s1611_s0 + $0xb0] sm:$0xff]  ;;  %v619_v23 = vld [vmem:[%s1611_s0 + $0xb8] sm:$0xff] }
   0x9   :  { %588 = vst [vmem:[%s1612_s2 + $0x38] sm:$0xff] %v587_v7  ;;  %v621_v24 = vld [vmem:[%s1611_s0 + $0xc0] sm:$0xff]  ;;  %v623_v25 = vld [vmem:[%s1611_s0 + $0xc8] sm:$0xff]  ;;  %v625_v26 = vld [vmem:[%s1611_s0 + $0xd0] sm:$0xff] }
   0xa   :  { %590 = vst [vmem:[%s1612_s2 + $0x40] sm:$0xff] %v589_v8  ;;  %v627_v27 = vld [vmem:[%s1611_s0 + $0xd8] sm:$0xff]  ;;  %v629_v28 = vld [vmem:[%s1611_s0 + $0xe0] sm:$0xff]  ;;  %v631_v29 = vld [vmem:[%s1611_s0 + $0xe8] sm:$0xff] }
   0xb   :  { %592 = vst [vmem:[%s1612_s2 + $0x48] sm:$0xff] %v591_v9  ;;  %v633_v30 = vld [vmem:[%s1611_s0 + $0xf0] sm:$0xff]  ;;  %v635_v31 = vld [vmem:[%s1611_s0 + $0xf8] sm:$0xff]  ;;  %v637_v32 = vld [vmem:[%s1611_s0 + $0x100] sm:$0xff] }
   0xc   :  { %594 = vst [vmem:[%s1612_s2 + $0x50] sm:$0xff] %v593_v10  ;;  %v639_v33 = vld [vmem:[%s1611_s0 + $0x108] sm:$0xff]  ;;  %v641_v34 = vld [vmem:[%s1611_s0 + $0x110] sm:$0xff]  ;;  %v643_v35 = vld [vmem:[%s1611_s0 + $0x118] sm:$0xff] }
   0xd   :  { %596 = vst [vmem:[%s1612_s2 + $0x58] sm:$0xff] %v595_v11  ;;  %v645_v36 = vld [vmem:[%s1611_s0 + $0x120] sm:$0xff]  ;;  %v647_v37 = vld [vmem:[%s1611_s0 + $0x128] sm:$0xff]  ;;  %v649_v38 = vld [vmem:[%s1611_s0 + $0x130] sm:$0xff] }
   0xe   :  { %598 = vst [vmem:[%s1612_s2 + $0x60] sm:$0xff] %v597_v12  ;;  %v651_v39 = vld [vmem:[%s1611_s0 + $0x138] sm:$0xff]  ;;  %v653_v40 = vld [vmem:[%s1611_s0 + $0x140] sm:$0xff]  ;;  %v655_v41 = vld [vmem:[%s1611_s0 + $0x148] sm:$0xff] }
   0xf   :  { %600 = vst [vmem:[%s1612_s2 + $0x68] sm:$0xff] %v599_v13  ;;  %v657_v42 = vld [vmem:[%s1611_s0 + $0x150] sm:$0xff]  ;;  %v659_v43 = vld [vmem:[%s1611_s0 + $0x158] sm:$0xff]  ;;  %v661_v44 = vld [vmem:[%s1611_s0 + $0x160] sm:$0xff] }
  0x10   :  { %602 = vst [vmem:[%s1612_s2 + $0x70] sm:$0xff] %v601_v14  ;;  %v663_v45 = vld [vmem:[%s1611_s0 + $0x168] sm:$0xff]  ;;  %v665_v46 = vld [vmem:[%s1611_s0 + $0x170] sm:$0xff]  ;;  %v667_v47 = vld [vmem:[%s1611_s0 + $0x178] sm:$0xff] }
  0x11   :  { %604 = vst [vmem:[%s1612_s2 + $0x78] sm:$0xff] %v603_v15  ;;  %v669_v48 = vld [vmem:[%s1611_s0 + $0x180] sm:$0xff]  ;;  %v671_v49 = vld [vmem:[%s1611_s0 + $0x188] sm:$0xff]  ;;  %v673_v50 = vld [vmem:[%s1611_s0 + $0x190] sm:$0xff] }
  0x12   :  { %606 = vst [vmem:[%s1612_s2 + $0x80] sm:$0xff] %v605_v16  ;;  %v675_v51 = vld [vmem:[%s1611_s0 + $0x198] sm:$0xff]  ;;  %v677_v52 = vld [vmem:[%s1611_s0 + $0x1a0] sm:$0xff]  ;;  %v679_v53 = vld [vmem:[%s1611_s0 + $0x1a8] sm:$0xff] }
  0x13   :  { %608 = vst [vmem:[%s1612_s2 + $0x88] sm:$0xff] %v607_v17  ;;  %v681_v54 = vld [vmem:[%s1611_s0 + $0x1b0] sm:$0xff]  ;;  %v683_v55 = vld [vmem:[%s1611_s0 + $0x1b8] sm:$0xff]  ;;  %v685_v56 = vld [vmem:[%s1611_s0 + $0x1c0] sm:$0xff] }
  0x14   :  { %610 = vst [vmem:[%s1612_s2 + $0x90] sm:$0xff] %v609_v18  ;;  %v687_v57 = vld [vmem:[%s1611_s0 + $0x1c8] sm:$0xff]  ;;  %v689_v58 = vld [vmem:[%s1611_s0 + $0x1d0] sm:$0xff]  ;;  %v691_v59 = vld [vmem:[%s1611_s0 + $0x1d8] sm:$0xff] }
  0x15   :  { %612 = vst [vmem:[%s1612_s2 + $0x98] sm:$0xff] %v611_v19  ;;  %v693_v60 = vld [vmem:[%s1611_s0 + $0x1e0] sm:$0xff]  ;;  %v695_v61 = vld [vmem:[%s1611_s0 + $0x1e8] sm:$0xff]  ;;  %v697_v62 = vld [vmem:[%s1611_s0 + $0x1f0] sm:$0xff] }
  0x16   :  { %614 = vst [vmem:[%s1612_s2 + $0xa0] sm:$0xff] %v613_v20  ;;  %v699_v63 = vld [vmem:[%s1611_s0 + $0x1f8] sm:$0xff]  ;;  %v258_v0 = vld [vmem:[%s1613_s1] sm:$0xff]  ;;  %v702_v1 = vld [vmem:[%s1613_s1 + $0x8] sm:$0xff] }
  0x17   :  { %616 = vst [vmem:[%s1612_s2 + $0xa8] sm:$0xff] %v615_v21  ;;  %v704_v2 = vld [vmem:[%s1613_s1 + $0x10] sm:$0xff]  ;;  %v706_v3 = vld [vmem:[%s1613_s1 + $0x18] sm:$0xff]  ;;  %v708_v4 = vld [vmem:[%s1613_s1 + $0x20] sm:$0xff] }
  0x18   :  { %618 = vst [vmem:[%s1612_s2 + $0xb0] sm:$0xff] %v617_v22  ;;  %v710_v5 = vld [vmem:[%s1613_s1 + $0x28] sm:$0xff]  ;;  %v712_v6 = vld [vmem:[%s1613_s1 + $0x30] sm:$0xff]  ;;  %v714_v7 = vld [vmem:[%s1613_s1 + $0x38] sm:$0xff] }
  0x19   :  { %620 = vst [vmem:[%s1612_s2 + $0xb8] sm:$0xff] %v619_v23  ;;  %v716_v8 = vld [vmem:[%s1613_s1 + $0x40] sm:$0xff]  ;;  %v718_v9 = vld [vmem:[%s1613_s1 + $0x48] sm:$0xff]  ;;  %v720_v10 = vld [vmem:[%s1613_s1 + $0x50] sm:$0xff] }
  0x1a   :  { %622 = vst [vmem:[%s1612_s2 + $0xc0] sm:$0xff] %v621_v24  ;;  %v722_v11 = vld [vmem:[%s1613_s1 + $0x58] sm:$0xff]  ;;  %v724_v12 = vld [vmem:[%s1613_s1 + $0x60] sm:$0xff]  ;;  %v726_v13 = vld [vmem:[%s1613_s1 + $0x68] sm:$0xff] }
  0x1b   :  { %624 = vst [vmem:[%s1612_s2 + $0xc8] sm:$0xff] %v623_v25  ;;  %v728_v14 = vld [vmem:[%s1613_s1 + $0x70] sm:$0xff]  ;;  %v730_v15 = vld [vmem:[%s1613_s1 + $0x78] sm:$0xff]  ;;  %v732_v16 = vld [vmem:[%s1613_s1 + $0x80] sm:$0xff] }
  0x1c   :  { %626 = vst [vmem:[%s1612_s2 + $0xd0] sm:$0xff] %v625_v26  ;;  %v734_v17 = vld [vmem:[%s1613_s1 + $0x88] sm:$0xff]  ;;  %v736_v18 = vld [vmem:[%s1613_s1 + $0x90] sm:$0xff]  ;;  %v738_v19 = vld [vmem:[%s1613_s1 + $0x98] sm:$0xff] }
  0x1d   :  { %628 = vst [vmem:[%s1612_s2 + $0xd8] sm:$0xff] %v627_v27  ;;  %v740_v20 = vld [vmem:[%s1613_s1 + $0xa0] sm:$0xff]  ;;  %v742_v21 = vld [vmem:[%s1613_s1 + $0xa8] sm:$0xff]  ;;  %v744_v22 = vld [vmem:[%s1613_s1 + $0xb0] sm:$0xff] }
  0x1e   :  { %630 = vst [vmem:[%s1612_s2 + $0xe0] sm:$0xff] %v629_v28  ;;  %v746_v23 = vld [vmem:[%s1613_s1 + $0xb8] sm:$0xff]  ;;  %v748_v24 = vld [vmem:[%s1613_s1 + $0xc0] sm:$0xff]  ;;  %v750_v25 = vld [vmem:[%s1613_s1 + $0xc8] sm:$0xff] }
  0x1f   :  { %632 = vst [vmem:[%s1612_s2 + $0xe8] sm:$0xff] %v631_v29  ;;  %v752_v26 = vld [vmem:[%s1613_s1 + $0xd0] sm:$0xff]  ;;  %v754_v27 = vld [vmem:[%s1613_s1 + $0xd8] sm:$0xff]  ;;  %v756_v28 = vld [vmem:[%s1613_s1 + $0xe0] sm:$0xff] }
  0x20   :  { %634 = vst [vmem:[%s1612_s2 + $0xf0] sm:$0xff] %v633_v30  ;;  %v758_v29 = vld [vmem:[%s1613_s1 + $0xe8] sm:$0xff]  ;;  %v760_v30 = vld [vmem:[%s1613_s1 + $0xf0] sm:$0xff] }
  0x21   :  { %636 = vst [vmem:[%s1612_s2 + $0xf8] sm:$0xff] %v635_v31  ;;  %v762_v31 = vld [vmem:[%s1613_s1 + $0xf8] sm:$0xff] }
  0x22   :  { %638 = vst [vmem:[%s1612_s2 + $0x100] sm:$0xff] %v637_v32  ;;  %v764_v32 = vld [vmem:[%s1613_s1 + $0x100] sm:$0xff] }
  0x23   :  { %640 = vst [vmem:[%s1612_s2 + $0x108] sm:$0xff] %v639_v33  ;;  %v766_v33 = vld [vmem:[%s1613_s1 + $0x108] sm:$0xff] }
  0x24   :  { %642 = vst [vmem:[%s1612_s2 + $0x110] sm:$0xff] %v641_v34  ;;  %v768_v34 = vld [vmem:[%s1613_s1 + $0x110] sm:$0xff] }
  0x25   :  { %644 = vst [vmem:[%s1612_s2 + $0x118] sm:$0xff] %v643_v35  ;;  %v770_v35 = vld [vmem:[%s1613_s1 + $0x118] sm:$0xff] }
  0x26   :  { %646 = vst [vmem:[%s1612_s2 + $0x120] sm:$0xff] %v645_v36  ;;  %v772_v36 = vld [vmem:[%s1613_s1 + $0x120] sm:$0xff] }
  0x27   :  { %648 = vst [vmem:[%s1612_s2 + $0x128] sm:$0xff] %v647_v37  ;;  %v774_v37 = vld [vmem:[%s1613_s1 + $0x128] sm:$0xff] }
  0x28   :  { %650 = vst [vmem:[%s1612_s2 + $0x130] sm:$0xff] %v649_v38  ;;  %v776_v38 = vld [vmem:[%s1613_s1 + $0x130] sm:$0xff] }
  0x29   :  { %652 = vst [vmem:[%s1612_s2 + $0x138] sm:$0xff] %v651_v39  ;;  %v778_v39 = vld [vmem:[%s1613_s1 + $0x138] sm:$0xff] }
  0x2a   :  { %654 = vst [vmem:[%s1612_s2 + $0x140] sm:$0xff] %v653_v40  ;;  %v780_v40 = vld [vmem:[%s1613_s1 + $0x140] sm:$0xff] }
  0x2b   :  { %656 = vst [vmem:[%s1612_s2 + $0x148] sm:$0xff] %v655_v41  ;;  %v782_v41 = vld [vmem:[%s1613_s1 + $0x148] sm:$0xff] }
  0x2c   :  { %658 = vst [vmem:[%s1612_s2 + $0x150] sm:$0xff] %v657_v42  ;;  %v784_v42 = vld [vmem:[%s1613_s1 + $0x150] sm:$0xff] }
  0x2d   :  { %660 = vst [vmem:[%s1612_s2 + $0x158] sm:$0xff] %v659_v43  ;;  %v786_v43 = vld [vmem:[%s1613_s1 + $0x158] sm:$0xff] }
  0x2e   :  { %662 = vst [vmem:[%s1612_s2 + $0x160] sm:$0xff] %v661_v44  ;;  %v788_v44 = vld [vmem:[%s1613_s1 + $0x160] sm:$0xff] }
  0x2f   :  { %664 = vst [vmem:[%s1612_s2 + $0x168] sm:$0xff] %v663_v45  ;;  %v790_v45 = vld [vmem:[%s1613_s1 + $0x168] sm:$0xff] }
  0x30   :  { %666 = vst [vmem:[%s1612_s2 + $0x170] sm:$0xff] %v665_v46  ;;  %v792_v46 = vld [vmem:[%s1613_s1 + $0x170] sm:$0xff] }
  0x31   :  { %668 = vst [vmem:[%s1612_s2 + $0x178] sm:$0xff] %v667_v47  ;;  %v794_v47 = vld [vmem:[%s1613_s1 + $0x178] sm:$0xff] }
  0x32   :  { %670 = vst [vmem:[%s1612_s2 + $0x180] sm:$0xff] %v669_v48  ;;  %v796_v48 = vld [vmem:[%s1613_s1 + $0x180] sm:$0xff] }
  0x33   :  { %672 = vst [vmem:[%s1612_s2 + $0x188] sm:$0xff] %v671_v49  ;;  %v798_v49 = vld [vmem:[%s1613_s1 + $0x188] sm:$0xff] }
  0x34   :  { %674 = vst [vmem:[%s1612_s2 + $0x190] sm:$0xff] %v673_v50  ;;  %v800_v50 = vld [vmem:[%s1613_s1 + $0x190] sm:$0xff] }
  0x35   :  { %676 = vst [vmem:[%s1612_s2 + $0x198] sm:$0xff] %v675_v51  ;;  %v802_v51 = vld [vmem:[%s1613_s1 + $0x198] sm:$0xff] }
  0x36   :  { %678 = vst [vmem:[%s1612_s2 + $0x1a0] sm:$0xff] %v677_v52  ;;  %v804_v52 = vld [vmem:[%s1613_s1 + $0x1a0] sm:$0xff] }
  0x37   :  { %680 = vst [vmem:[%s1612_s2 + $0x1a8] sm:$0xff] %v679_v53  ;;  %v806_v53 = vld [vmem:[%s1613_s1 + $0x1a8] sm:$0xff] }
  0x38   :  { %682 = vst [vmem:[%s1612_s2 + $0x1b0] sm:$0xff] %v681_v54  ;;  %v808_v54 = vld [vmem:[%s1613_s1 + $0x1b0] sm:$0xff] }
  0x39   :  { %684 = vst [vmem:[%s1612_s2 + $0x1b8] sm:$0xff] %v683_v55  ;;  %v810_v55 = vld [vmem:[%s1613_s1 + $0x1b8] sm:$0xff] }
  0x3a   :  { %686 = vst [vmem:[%s1612_s2 + $0x1c0] sm:$0xff] %v685_v56  ;;  %v812_v56 = vld [vmem:[%s1613_s1 + $0x1c0] sm:$0xff] }
  0x3b   :  { %688 = vst [vmem:[%s1612_s2 + $0x1c8] sm:$0xff] %v687_v57  ;;  %v814_v57 = vld [vmem:[%s1613_s1 + $0x1c8] sm:$0xff] }
  0x3c   :  { %690 = vst [vmem:[%s1612_s2 + $0x1d0] sm:$0xff] %v689_v58  ;;  %v816_v58 = vld [vmem:[%s1613_s1 + $0x1d0] sm:$0xff] }
  0x3d   :  { %692 = vst [vmem:[%s1612_s2 + $0x1d8] sm:$0xff] %v691_v59  ;;  %v818_v59 = vld [vmem:[%s1613_s1 + $0x1d8] sm:$0xff] }
  0x3e   :  { %694 = vst [vmem:[%s1612_s2 + $0x1e0] sm:$0xff] %v693_v60  ;;  %v820_v60 = vld [vmem:[%s1613_s1 + $0x1e0] sm:$0xff] }
  0x3f   :  { %696 = vst [vmem:[%s1612_s2 + $0x1e8] sm:$0xff] %v695_v61  ;;  %v822_v61 = vld [vmem:[%s1613_s1 + $0x1e8] sm:$0xff] }
  0x40   :  { %698 = vst [vmem:[%s1612_s2 + $0x1f0] sm:$0xff] %v697_v62  ;;  %v824_v62 = vld [vmem:[%s1613_s1 + $0x1f0] sm:$0xff] }
  0x41   :  { %700 = vst [vmem:[%s1612_s2 + $0x1f8] sm:$0xff] %v699_v63  ;;  %v826_v63 = vld [vmem:[%s1613_s1 + $0x1f8] sm:$0xff] }
  0x42   :  { %701 = vst [vmem:[%s1612_s2 + $0x200] sm:$0xff] %v258_v0 }
  0x43   :  { %703 = vst [vmem:[%s1612_s2 + $0x208] sm:$0xff] %v702_v1 }
  0x44   :  { %705 = vst [vmem:[%s1612_s2 + $0x210] sm:$0xff] %v704_v2 }
  0x45   :  { %707 = vst [vmem:[%s1612_s2 + $0x218] sm:$0xff] %v706_v3 }
  0x46   :  { %709 = vst [vmem:[%s1612_s2 + $0x220] sm:$0xff] %v708_v4 }
  0x47   :  { %711 = vst [vmem:[%s1612_s2 + $0x228] sm:$0xff] %v710_v5 }
  0x48   :  { %713 = vst [vmem:[%s1612_s2 + $0x230] sm:$0xff] %v712_v6 }
  0x49   :  { %715 = vst [vmem:[%s1612_s2 + $0x238] sm:$0xff] %v714_v7 }
  0x4a   :  { %717 = vst [vmem:[%s1612_s2 + $0x240] sm:$0xff] %v716_v8 }
  0x4b   :  { %719 = vst [vmem:[%s1612_s2 + $0x248] sm:$0xff] %v718_v9 }
  0x4c   :  { %721 = vst [vmem:[%s1612_s2 + $0x250] sm:$0xff] %v720_v10 }
  0x4d   :  { %723 = vst [vmem:[%s1612_s2 + $0x258] sm:$0xff] %v722_v11 }
  0x4e   :  { %725 = vst [vmem:[%s1612_s2 + $0x260] sm:$0xff] %v724_v12 }
  0x4f   :  { %727 = vst [vmem:[%s1612_s2 + $0x268] sm:$0xff] %v726_v13 }
  0x50   :  { %729 = vst [vmem:[%s1612_s2 + $0x270] sm:$0xff] %v728_v14 }
  0x51   :  { %731 = vst [vmem:[%s1612_s2 + $0x278] sm:$0xff] %v730_v15 }
  0x52   :  { %733 = vst [vmem:[%s1612_s2 + $0x280] sm:$0xff] %v732_v16 }
  0x53   :  { %735 = vst [vmem:[%s1612_s2 + $0x288] sm:$0xff] %v734_v17 }
  0x54   :  { %737 = vst [vmem:[%s1612_s2 + $0x290] sm:$0xff] %v736_v18 }
  0x55   :  { %739 = vst [vmem:[%s1612_s2 + $0x298] sm:$0xff] %v738_v19 }
  0x56   :  { %741 = vst [vmem:[%s1612_s2 + $0x2a0] sm:$0xff] %v740_v20 }
  0x57   :  { %743 = vst [vmem:[%s1612_s2 + $0x2a8] sm:$0xff] %v742_v21 }
  0x58   :  { %745 = vst [vmem:[%s1612_s2 + $0x2b0] sm:$0xff] %v744_v22 }
  0x59   :  { %747 = vst [vmem:[%s1612_s2 + $0x2b8] sm:$0xff] %v746_v23 }
  0x5a   :  { %749 = vst [vmem:[%s1612_s2 + $0x2c0] sm:$0xff] %v748_v24 }
  0x5b   :  { %751 = vst [vmem:[%s1612_s2 + $0x2c8] sm:$0xff] %v750_v25 }
  0x5c   :  { %753 = vst [vmem:[%s1612_s2 + $0x2d0] sm:$0xff] %v752_v26 }
  0x5d   :  { %755 = vst [vmem:[%s1612_s2 + $0x2d8] sm:$0xff] %v754_v27 }
  0x5e   :  { %757 = vst [vmem:[%s1612_s2 + $0x2e0] sm:$0xff] %v756_v28 }
  0x5f   :  { %759 = vst [vmem:[%s1612_s2 + $0x2e8] sm:$0xff] %v758_v29 }
  0x60   :  { %761 = vst [vmem:[%s1612_s2 + $0x2f0] sm:$0xff] %v760_v30 }
  0x61   :  { %763 = vst [vmem:[%s1612_s2 + $0x2f8] sm:$0xff] %v762_v31 }
  0x62   :  { %765 = vst [vmem:[%s1612_s2 + $0x300] sm:$0xff] %v764_v32 }
  0x63   :  { %767 = vst [vmem:[%s1612_s2 + $0x308] sm:$0xff] %v766_v33 }
  0x64   :  { %769 = vst [vmem:[%s1612_s2 + $0x310] sm:$0xff] %v768_v34 }
  0x65   :  { %771 = vst [vmem:[%s1612_s2 + $0x318] sm:$0xff] %v770_v35 }
  0x66   :  { %773 = vst [vmem:[%s1612_s2 + $0x320] sm:$0xff] %v772_v36 }
  0x67   :  { %775 = vst [vmem:[%s1612_s2 + $0x328] sm:$0xff] %v774_v37 }
  0x68   :  { %777 = vst [vmem:[%s1612_s2 + $0x330] sm:$0xff] %v776_v38 }
  0x69   :  { %779 = vst [vmem:[%s1612_s2 + $0x338] sm:$0xff] %v778_v39 }
  0x6a   :  { %781 = vst [vmem:[%s1612_s2 + $0x340] sm:$0xff] %v780_v40 }
  0x6b   :  { %783 = vst [vmem:[%s1612_s2 + $0x348] sm:$0xff] %v782_v41 }
  0x6c   :  { %785 = vst [vmem:[%s1612_s2 + $0x350] sm:$0xff] %v784_v42 }
  0x6d   :  { %787 = vst [vmem:[%s1612_s2 + $0x358] sm:$0xff] %v786_v43 }
  0x6e   :  { %789 = vst [vmem:[%s1612_s2 + $0x360] sm:$0xff] %v788_v44 }
  0x6f   :  { %791 = vst [vmem:[%s1612_s2 + $0x368] sm:$0xff] %v790_v45 }
  0x70   :  { %793 = vst [vmem:[%s1612_s2 + $0x370] sm:$0xff] %v792_v46 }
  0x71   :  { %795 = vst [vmem:[%s1612_s2 + $0x378] sm:$0xff] %v794_v47 }
  0x72   :  { %797 = vst [vmem:[%s1612_s2 + $0x380] sm:$0xff] %v796_v48 }
  0x73   :  { %799 = vst [vmem:[%s1612_s2 + $0x388] sm:$0xff] %v798_v49 }
  0x74   :  { %801 = vst [vmem:[%s1612_s2 + $0x390] sm:$0xff] %v800_v50 }
  0x75   :  { %803 = vst [vmem:[%s1612_s2 + $0x398] sm:$0xff] %v802_v51 }
  0x76   :  { %805 = vst [vmem:[%s1612_s2 + $0x3a0] sm:$0xff] %v804_v52 }
  0x77   :  { %807 = vst [vmem:[%s1612_s2 + $0x3a8] sm:$0xff] %v806_v53 }
  0x78   :  { %809 = vst [vmem:[%s1612_s2 + $0x3b0] sm:$0xff] %v808_v54 }
  0x79   :  { %811 = vst [vmem:[%s1612_s2 + $0x3b8] sm:$0xff] %v810_v55 }
  0x7a   :  { %813 = vst [vmem:[%s1612_s2 + $0x3c0] sm:$0xff] %v812_v56 }
  0x7b   :  { %815 = vst [vmem:[%s1612_s2 + $0x3c8] sm:$0xff] %v814_v57 }
  0x7c   :  { %817 = vst [vmem:[%s1612_s2 + $0x3d0] sm:$0xff] %v816_v58 }
  0x7d   :  { %819 = vst [vmem:[%s1612_s2 + $0x3d8] sm:$0xff] %v818_v59 }
  0x7e   :  { %821 = vst [vmem:[%s1612_s2 + $0x3e0] sm:$0xff] %v820_v60 }
  0x7f   :  { %823 = vst [vmem:[%s1612_s2 + $0x3e8] sm:$0xff] %v822_v61 }
  0x80   :  { %825 = vst [vmem:[%s1612_s2 + $0x3f0] sm:$0xff] %v824_v62 }
  0x81   :  { %827 = vst [vmem:[%s1612_s2 + $0x3f8] sm:$0xff] %v826_v63 }

</bundles_post_ra>
